<compile_context>
chip_gen: v6e
topology: v6e:2x2x1
jax: 0.10.0
libtpu: 0.0.40
codegen_flags: <defaults>
</compile_context>

<pallas_src>
import functools

import numpy as np
import jax
import jax.numpy as jnp
from jax.experimental import pallas as pl
from jax.experimental.pallas import tpu as pltpu

_LANE = 128
_VMEM_LIMIT_BYTES = 48 * 1024 * 1024   # safe on v7x (64 MiB phys); v5e/v6e have more


def _round_up(x, m):
    return ((x + m - 1) // m) * m


def _pick_tiles(n):
    """(tm, tk): row tile / source-node (reduction) tile.  tm | tk always."""
    if n <= 256:
        return 128, 128
    if n <= 1024:
        return 256, 256          # keeps >= 2 row tiles for v7x's two TensorCores
    if n <= 4096:
        return 256, 1024
    return 512, 2048


# ---------------------------------------------------------------------------
# Kernel 1: dense projection  XW = X @ W   (row-tiled, W resident, bf16 MXU)
# ---------------------------------------------------------------------------
def _proj_kernel(x_ref, w_ref, o_ref):
    o_ref[...] = jnp.dot(x_ref[...], w_ref[...],
                         preferred_element_type=jnp.float32).astype(o_ref.dtype)


def _project(x_p, w_p, *, tm):
    n_pad, f_pad = x_p.shape
    d_pad = w_p.shape[1]
    return pl.pallas_call(
        _proj_kernel,
        out_shape=jax.ShapeDtypeStruct((n_pad, d_pad), jnp.bfloat16),
        grid_spec=pltpu.PrefetchScalarGridSpec(
            num_scalar_prefetch=0,
            grid=(n_pad // tm,),
            in_specs=[
                pl.BlockSpec((tm, f_pad), lambda i: (i, 0)),      # X row tile
                pl.BlockSpec((f_pad, d_pad), lambda i: (0, 0)),   # W (VMEM-resident)
            ],
            out_specs=pl.BlockSpec((tm, d_pad), lambda i: (i, 0)),
        ),
        compiler_params=pltpu.CompilerParams(
            dimension_semantics=("parallel",),
            vmem_limit_bytes=_VMEM_LIMIT_BYTES,
        ),
    )(x_p, w_p)


# ---------------------------------------------------------------------------
# Kernel 2: block-sparse aggregation  out = act(A_hat @ XW + b)
#   grid = (row tiles, max nonzero k-blocks per row tile)
#   scalar prefetch: per-row-tile nonzero column-block ids + counts (SMEM)
# ---------------------------------------------------------------------------
def _agg_kernel(ids_ref, cnt_ref, a_ref, xw_ref, b_ref, out_ref, acc_ref,
                *, tk, apply_relu):
    i = pl.program_id(0)
    k = pl.program_id(1)

    @pl.when(k == 0)
    def _():
        acc_ref[...] = jnp.zeros_like(acc_ref)

    # Skip padded schedule entries (k >= number of nonzero blocks for this row tile).
    @pl.when(k < cnt_ref[i])
    def _():
        kb = ids_ref[i, k]                       # which column block of A_hat
        acc_ref[...] += jnp.dot(a_ref[...],
                                xw_ref[pl.ds(kb * tk, tk), :],   # resident features
                                preferred_element_type=jnp.float32)

    @pl.when(k == pl.num_programs(1) - 1)
    def _():
        y = acc_ref[...] + b_ref[...]
        if apply_relu:
            y = jnp.maximum(y, 0.0)
        out_ref[...] = y.astype(out_ref.dtype)


def _aggregate(a_p, xw_p, b_p, kblock_ids, kblock_cnt, *, relu, out_dtype, tm, tk):
    n_pad = a_p.shape[0]
    d_pad = xw_p.shape[1]
    n_row = n_pad // tm
    max_k = kblock_ids.shape[1]

    kernel = functools.partial(_agg_kernel, tk=tk, apply_relu=relu)
    return pl.pallas_call(
        kernel,
        out_shape=jax.ShapeDtypeStruct((n_pad, d_pad), out_dtype),
        grid_spec=pltpu.PrefetchScalarGridSpec(
            num_scalar_prefetch=2,               # kblock_ids, kblock_cnt -> SMEM
            grid=(n_row, max_k),
            in_specs=[
                # A_hat tile; column block gathered from the sparse schedule.
                pl.BlockSpec((tm, tk), lambda i, k, ids, cnt: (i, ids[i, k])),
                # Projected node features: VMEM-resident, DMA'd from HBM once.
                pl.BlockSpec((n_pad, d_pad), lambda i, k, ids, cnt: (0, 0)),
                # Bias: VMEM-resident.
                pl.BlockSpec((1, d_pad), lambda i, k, ids, cnt: (0, 0)),
            ],
            out_specs=pl.BlockSpec((tm, d_pad), lambda i, k, ids, cnt: (i, 0)),
            scratch_shapes=[pltpu.VMEM((tm, d_pad), jnp.float32)],   # f32 accumulator
        ),
        compiler_params=pltpu.CompilerParams(
            dimension_semantics=("parallel", "arbitrary"),
            vmem_limit_bytes=_VMEM_LIMIT_BYTES,
        ),
    )(kblock_ids, kblock_cnt, a_p, xw_p, b_p)


# ---------------------------------------------------------------------------
# Host-side block-sparsity schedule for A_hat (computed once, reused by both layers)
# ---------------------------------------------------------------------------
def _block_schedule(a_np, tm, tk):
    n_pad = a_np.shape[0]
    n_row, n_col = n_pad // tm, n_pad // tk
    blk = (a_np.reshape(n_row, tm, n_col, tk) != 0).any(axis=(1, 3))
    cnt = blk.sum(axis=1).astype(np.int32)
    max_k = max(int(cnt.max()), 1)
    ids = np.zeros((n_row, max_k), np.int32)
    for r in range(n_row):
        nz = np.nonzero(blk[r])[0].astype(np.int32)
        if nz.size == 0:
            nz = np.zeros((1,), np.int32)
        ids[r, :nz.size] = nz
        ids[r, nz.size:] = nz[-1]    # repeat last id: unchanged block index => no extra DMA
    return jnp.asarray(ids), jnp.asarray(cnt)


# ---------------------------------------------------------------------------
# Wrapper: pad to lane-dense / tile-aligned shapes and run both GCNConv layers
# ---------------------------------------------------------------------------
def gcn_pallas(a_hat, x, w1, b1, w2, b2, *, training=False, seed=0):
    """2-layer GCN forward; returns flattened output (matches x.view(-1))."""
    n, input_dim = x.shape
    hidden_dim = w1.shape[1]
    output_dim = w2.shape[1]

    tm, tk = _pick_tiles(n)
    n_pad = _round_up(n, tk)                  # tk is a multiple of tm
    f_pad = _round_up(input_dim, _LANE)
    h_pad = _round_up(hidden_dim, _LANE)
    o_pad = _round_up(output_dim, _LANE)

    # Padded, lane-dense operands (bf16 streaming, f32 MXU accumulate).
    a_np = np.zeros((n_pad, n_pad), np.float32)
    a_np[:n, :n] = np.asarray(a_hat, np.float32)
    kblock_ids, kblock_cnt = _block_schedule(a_np, tm, tk)
    a_p = jnp.asarray(a_np, dtype=jnp.bfloat16)

    x_p = jnp.zeros((n_pad, f_pad), jnp.bfloat16).at[:n, :input_dim].set(
        x.astype(jnp.bfloat16))
    w1_p = jnp.zeros((f_pad, h_pad), jnp.bfloat16).at[:input_dim, :hidden_dim].set(
        w1.astype(jnp.bfloat16))
    b1_p = jnp.zeros((1, h_pad), jnp.float32).at[:, :hidden_dim].set(b1.reshape(1, -1))
    w2_p = jnp.zeros((h_pad, o_pad), jnp.bfloat16).at[:hidden_dim, :output_dim].set(
        w2.astype(jnp.bfloat16))
    b2_p = jnp.zeros((1, o_pad), jnp.float32).at[:, :output_dim].set(b2.reshape(1, -1))

    # Layer 1:  H = relu(A_hat @ (X @ W1) + b1)
    xw1 = _project(x_p, w1_p, tm=tm)
    h = _aggregate(a_p, xw1, b1_p, kblock_ids, kblock_cnt,
                   relu=True, out_dtype=jnp.bfloat16, tm=tm, tk=tk)

    # Dropout(p=0.5) between layers, inverted scaling.
    # TODO(synk): mask generated with jax.random in the wrapper (in-kernel TPU
    #             hardware PRNG is unavailable on the interpret fallback); mask
    #             stream will not match a torch-seeded run.
    if training:
        keep = jax.random.bernoulli(jax.random.PRNGKey(seed), 0.5, h.shape)
        h = jnp.where(keep, h * 2.0, 0.0).astype(jnp.bfloat16)

    # Layer 2:  out = A_hat @ (H @ W2) + b2
    hw2 = _project(h, w2_p, tm=tm)
    out = _aggregate(a_p, hw2, b2_p, kblock_ids, kblock_cnt,
                     relu=False, out_dtype=jnp.float32, tm=tm, tk=tk)
    return out[:n, :output_dim].reshape(-1)          # x.view(-1)


# ---------------------------------------------------------------------------
# Plain-JAX glue: GCNConv normalized adjacency, params, reference
# ---------------------------------------------------------------------------
def normalized_adjacency(edge_index, num_nodes):
    src, dst = edge_index[0], edge_index[1]
    loop = jnp.arange(num_nodes, dtype=src.dtype)
    src = jnp.concatenate([src, loop])
    dst = jnp.concatenate([dst, loop])
    a = jnp.zeros((num_nodes, num_nodes), jnp.float32).at[dst, src].add(1.0)
    deg = a.sum(axis=1)
    dinv = jnp.where(deg > 0.0, 1.0 / jnp.sqrt(deg), 0.0)
    return dinv[:, None] * a * dinv[None, :]          # D^-1/2 (A+I) D^-1/2


def init_params(key, input_dim, hidden_dim, output_dim):
    k1, k2 = jax.random.split(key)

    def glorot(k, fan_in, fan_out):
        lim = jnp.sqrt(6.0 / (fan_in + fan_out))
        return jax.random.uniform(k, (fan_in, fan_out), jnp.float32, -lim, lim)

    w1 = glorot(k1, input_dim, hidden_dim)
    b1 = jnp.zeros((1, hidden_dim), jnp.float32)
    w2 = glorot(k2, hidden_dim, output_dim)
    b2 = jnp.zeros((1, output_dim), jnp.float32)
    return w1, b1, w2, b2


def gcn_reference(a_hat, x, w1, b1, w2, b2):
    h = jnp.maximum(a_hat @ (x @ w1) + b1.reshape(1, -1), 0.0)
    return (a_hat @ (h @ w2) + b2.reshape(1, -1)).reshape(-1)


def _ring_edges(n):
    src = jnp.arange(n, dtype=jnp.int32)
    dst = (src + 1) % n
    return jnp.stack([jnp.concatenate([src, dst]),
                      jnp.concatenate([dst, src])], axis=0)


def _chain_edges(n):
    src = jnp.arange(n - 1, dtype=jnp.int32)
    dst = src + 1
    return jnp.stack([jnp.concatenate([src, dst]),
                      jnp.concatenate([dst, src])], axis=0)


if __name__ == "__main__":
    key = jax.random.PRNGKey(0)
    # input_dim padded to 256 while hidden/output pad to 128 -> exercises the
    # f_pad != h_pad case that broke the old accumulator shape.
    input_dim, hidden_dim, output_dim = 160, 32, 6

    kx1, kx2, kp = jax.random.split(key, 3)
    w1, b1, w2, b2 = init_params(kp, input_dim, hidden_dim, output_dim)

    # --- Case 1: tiny ring graph (single row tile, single k block) ----------
    n1 = 16
    x1 = jax.random.normal(kx1, (n1, input_dim), jnp.float32)
    a1 = normalized_adjacency(_ring_edges(n1), n1)
    out1 = jax.block_until_ready(gcn_pallas(a1, x1, w1, b1, w2, b2, training=False))
    ref1 = gcn_reference(a1, x1, w1, b1, w2, b2)
    assert out1.shape == (n1 * output_dim,)
    assert jnp.all(jnp.isfinite(out1))
    err1 = float(jnp.max(jnp.abs(out1 - ref1)))
    assert err1 < 0.1, f"mismatch vs reference (case 1): {err1}"

    # --- Case 2: chain graph (multi row-tile grid, ragged nonzero-block counts
    #             per row tile -> exercises the block-sparse skip path) -------
    n2 = 640
    x2 = jax.random.normal(kx2, (n2, input_dim), jnp.float32)
    a2 = normalized_adjacency(_chain_edges(n2), n2)
    out2 = jax.block_until_ready(gcn_pallas(a2, x2, w1, b1, w2, b2, training=False))
    ref2 = gcn_reference(a2, x2, w1, b1, w2, b2)
    assert out2.shape == (n2 * output_dim,)
    assert jnp.all(jnp.isfinite(out2))
    err2 = float(jnp.max(jnp.abs(out2 - ref2)))
    assert err2 < 0.1, f"mismatch vs reference (case 2): {err2}"

    # --- Case 3: training-mode forward (dropout active) ---------------------
    out3 = jax.block_until_ready(
        gcn_pallas(a1, x1, w1, b1, w2, b2, training=True, seed=7))
    assert out3.shape == (n1 * output_dim,)
    assert jnp.all(jnp.isfinite(out3))

    print("KERNEL_OK")
</pallas_src>

<mosaic_0001>
module attributes {stable_mosaic.version = 11 : i64} {
  func.func @_proj_kernel(%arg0: i32, %arg1: memref<128x256xbf16, #tpu.memory_space<vmem>>, %arg2: memref<256x128xbf16, #tpu.memory_space<vmem>>, %arg3: memref<128x128xbf16, #tpu.memory_space<vmem>>) attributes {dimension_semantics = [#tpu.dimension_semantics<parallel>], iteration_bounds = array<i64: 1>, scalar_prefetch = 0 : i64, scratch_operands = 0 : i64, tpu.core_type = #tpu.core_type<tc>, window_params = [{transform_indices = @transform_0, window_bounds = array<i64: 128, 256>}, {pipeline_mode = #tpu.pipeline_mode<synchronous>, transform_indices = @transform_1, window_bounds = array<i64: 256, 128>}, {transform_indices = @transform_2, window_bounds = array<i64: 128, 128>}]} {
    %c0 = arith.constant 0 : index
    %c0_0 = arith.constant 0 : index
    %0 = vector.load %arg1[%c0, %c0_0] : memref<128x256xbf16, #tpu.memory_space<vmem>>, vector<128x256xbf16>
    %c0_1 = arith.constant 0 : index
    %c0_2 = arith.constant 0 : index
    %1 = vector.load %arg2[%c0_1, %c0_2] : memref<256x128xbf16, #tpu.memory_space<vmem>>, vector<256x128xbf16>
    %cst = arith.constant dense<0.000000e+00> : vector<128x128xf32>
    %2 = tpu.matmul %0, %1, %cst {dimension_numbers = #tpu.dot_dimension_numbers<[1], [0], [0], [1], [0, 0, 1, 1], [], []>} : vector<128x256xbf16>, vector<256x128xbf16>, vector<128x128xf32> -> vector<128x128xf32>
    %3 = arith.truncf %2 : vector<128x128xf32> to vector<128x128xbf16>
    %c0_3 = arith.constant 0 : index
    %c0_4 = arith.constant 0 : index
    %4 = vector.load %arg3[%c0_3, %c0_4] : memref<128x128xbf16, #tpu.memory_space<vmem>>, vector<128x128xbf16>
    tpu.vector_store %arg3[%c0_3, %c0_4], %3 {strides = array<i32>} : memref<128x128xbf16, #tpu.memory_space<vmem>>, vector<128x128xbf16>,
    return
  }
  func.func @transform_0(%arg0: i32) -> (i32, i32) {
    %c0_i32 = arith.constant 0 : i32
    %c0_i32_0 = arith.constant 0 : i32
    return %arg0, %c0_i32 : i32, i32
  }
  func.func @transform_1(%arg0: i32) -> (i32, i32) {
    %c0_i32 = arith.constant 0 : i32
    %c0_i32_0 = arith.constant 0 : i32
    %c0_i32_1 = arith.constant 0 : i32
    return %c0_i32, %c0_i32_0 : i32, i32
  }
  func.func @transform_2(%arg0: i32) -> (i32, i32) {
    %c0_i32 = arith.constant 0 : i32
    %c0_i32_0 = arith.constant 0 : i32
    return %arg0, %c0_i32 : i32, i32
  }
}

</mosaic_0001>

<bundles_post_ra>
// kernel: tpu_custom_call.1
= control target key start
LH: loop header
LB: loop body
LE: loop exit
PB: predicated region body
PF: predicated region fallthrough
CT: control target
= control target key end

     0   :  { %7 = vsyncpa [#allocation3], 0  ;;  %s801_s0 = inlined_call_operand.hbm [shape: bf16[128,256], index: 0, kind: input, shape index: {}]   ;;  %s802_s1 = inlined_call_operand.hbm [shape: bf16[256,128], index: 1, kind: input, shape index: {}]   ;;  %s803_s2 = inlined_call_operand.hbm [shape: bf16[128,128], index: 2, kind: output, shape index: {}]  }
   0x1   :  { %8 = vsyncpa [#allocation6], 0 }
   0x2   :  { %9 = vsyncpa [#allocation4], 0  ;;  %s764_s9 = smov [#allocation2]  }
   0x3   :  { %s15_s10 = sshll.u32 %s764_s9, 4  ;;  %s16_s10 = int_to_ptr.vmem [resolvable:$true] %s15_s10 }
   0x4   :  { %s706_s11 = scalar_lea.vmem %s16_s10, 2048  ;;  %p711_p1 = scmp.lt.s32.totalorder %s16_s10, %s16_s10 }
   0x5   :  { %p707_p0 = scmp.ne.s32.totalorder %s16_s10, %s706_s11  ;;  %p712_p2 = scmp.lt.s32.totalorder %s706_s11, %s706_s11 }
   0x7   :  { %p713_p3 = por %p712_p2, %p711_p1 }
   0x9   :  { %p714_p4 = pnand %p713_p3, %p707_p0 }
   0xb   :  { %717 = shalt.err (!%p714_p4)
}
   0xc   :  { %s765_s12 = smov 128   ;;  %s766_s13 = smov 8  }
   0xd   :  { %21 = dma.hbm_to_vmem [thread:$0]  %s801_s0, 2048, %s16_s10, [#allocation3], %s765_s12, %s765_s12, %s766_s13  }
   0xe   :  { %s767_s16 = smov [#allocation5]  }
   0xf   :  { %s27_s17 = sshll.u32 %s767_s16, 4  ;;  %s28_s17 = int_to_ptr.vmem [resolvable:$true] %s27_s17 }
  0x10   :  { %s726_s18 = scalar_lea.vmem %s28_s17, 2048  ;;  %p731_p6 = scmp.lt.s32.totalorder %s28_s17, %s28_s17 }
  0x11   :  { %p727_p5 = scmp.ne.s32.totalorder %s28_s17, %s726_s18  ;;  %p732_p7 = scmp.lt.s32.totalorder %s726_s18, %s726_s18 }
  0x13   :  { %p733_p8 = por %p732_p7, %p731_p6 }
  0x15   :  { %p734_p9 = pnand %p733_p8, %p727_p5 }
  0x17   :  { %737 = shalt.err (!%p734_p9)
}
  0x18   :  { %s768_s19 = smov 64   ;;  %s769_s20 = smov 4  }
  0x19   :  { %33 = dma.hbm_to_vmem [thread:$0]  %s802_s1, 2048, %s28_s17, [#allocation6], %s768_s19, %s768_s19, %s769_s20  }
  0x1a   :  { %758 = dma.done.wait [#allocation3], 2048  }
  0x1b   :  { %759 = vsyncadd [#allocation3], 4294965248 }
  0x1c   :  { %760 = dma.done.wait [#allocation6], 2048  }
  0x1d   :  { %761 = vsyncadd [#allocation6], 4294965248  ;;  %v658_v0 = vld [vmem:[#allocation5 + $0x78] sm:$0xff]   ;;  %v660_v2 = vld [vmem:[#allocation5 + $0x70] sm:$0xff]   ;;  %s770_s0 = smov [#allocation7]  }
  0x1e   :  { %v659_v1 = vld [vmem:[#allocation5 + $0x38] sm:$0xff]   ;;  %571 = vmatprep.subr.bf16.mxu0 %v658_v0  ;;  %635 = vmatprep.subr.bf16.mxu1 %v658_v0  ;;  %v661_v3 = vld [vmem:[#allocation5 + $0x30] sm:$0xff]   ;;  %v662_v4 = vld [vmem:[#allocation5 + $0x68] sm:$0xff]   ;;  %s447_s1 = sshll.u32 %s770_s0, 4  ;;  %s448_s1 = int_to_ptr.vmem [resolvable:$true] %s447_s1 }
  0x1f   :  { %572 = vmatpush3.bf16.msra.mxu0 %v659_v1  ;;  %643 = vmatpush3.bf16.msra.mxu1 %v659_v1  ;;  %v663_v5 = vld [vmem:[#allocation5 + $0x28] sm:$0xff]   ;;  %v664_v6 = vld [vmem:[#allocation5 + $0x60] sm:$0xff]   ;;  %v666_v8 = vld [vmem:[#allocation5 + $0x58] sm:$0xff]   ;;  %s738_s23 = scalar_lea.vmem %s448_s1, 1024  ;;  %p743_p11 = scmp.lt.s32.totalorder %s448_s1, %s448_s1 }
  0x20   :  { %573 = vmatprep.subr.bf16.mxu0 %v660_v2  ;;  %636 = vmatprep.subr.bf16.mxu1 %v660_v2  ;;  %v665_v7 = vld [vmem:[#allocation5 + $0x20] sm:$0xff]   ;;  %v667_v9 = vld [vmem:[#allocation5 + $0x18] sm:$0xff]   ;;  %v668_v10 = vld [vmem:[#allocation5 + $0x50] sm:$0xff]   ;;  %p739_p10 = scmp.ne.s32.totalorder %s448_s1, %s738_s23  ;;  %p744_p12 = scmp.lt.s32.totalorder %s738_s23, %s738_s23 }
  0x21   :  { %v676_v11 = vld [vmem:[#allocation2 + $0x4] ss:$8 sps:$4 sm:$0xff]   ;;  %v669_v13 = vld [vmem:[#allocation5 + $0x10] sm:$0xff]   ;;  %v674_v18 = vld [vmem:[#allocation2] ss:$8 sps:$4 sm:$0xff]  }
  0x22   :  { %v679_v12 = vld [vmem:[#allocation2 + $0x44] ss:$8 sps:$4 sm:$0xff]   ;;  %297 = vmatprep.mubr.bf16.mxu0 %v676_v11  ;;  %v677_v19 = vld [vmem:[#allocation2 + $0x40] ss:$8 sps:$4 sm:$0xff]   ;;  %v680_v20 = vld [vmem:[#allocation2 + $0x14] ss:$8 sps:$4 sm:$0xff]   ;;  %p745_p13 = por %p744_p12, %p743_p11 }
  0x23   :  { %574 = vmatpush3.bf16.msra.mxu0 %v661_v3  ;;  %644 = vmatpush3.bf16.msra.mxu1 %v661_v3  ;;  %v670_v14 = vld [vmem:[#allocation5 + $0x48] sm:$0xff]   ;;  %v672_v16 = vld [vmem:[#allocation5 + $0x40] sm:$0xff]   ;;  %v682_v21 = vld [vmem:[#allocation2 + $0x54] ss:$8 sps:$4 sm:$0xff]  }
  0x24   :  { %575 = vmatprep.subr.bf16.mxu0 %v662_v4  ;;  %637 = vmatprep.subr.bf16.mxu1 %v662_v4  ;;  %v671_v15 = vld [vmem:[#allocation5 + $0x8] sm:$0xff]   ;;  %v673_v17 = vld [vmem:[#allocation5] sm:$0xff]   ;;  %v684_v22 = vld [vmem:[#allocation2 + $0x10] ss:$8 sps:$4 sm:$0xff]   ;;  %p746_p0 = pnand %p745_p13, %p739_p10 }
  0x25   :  { %329 = vmatprep.mubr.bf16.mxu1 %v679_v12  ;;  %v685_v23 = vld [vmem:[#allocation2 + $0x50] ss:$8 sps:$4 sm:$0xff]   ;;  %v686_v24 = vld [vmem:[#allocation2 + $0x24] ss:$8 sps:$4 sm:$0xff]   ;;  %v690_v26 = vld [vmem:[#allocation2 + $0x20] ss:$8 sps:$4 sm:$0xff]  }
  0x26   :  { %v688_v25 = vld [vmem:[#allocation2 + $0x64] ss:$8 sps:$4 sm:$0xff]   ;;  %v691_v27 = vld [vmem:[#allocation2 + $0x60] ss:$8 sps:$4 sm:$0xff]   ;;  %v692_v28 = vld [vmem:[#allocation2 + $0x34] ss:$8 sps:$4 sm:$0xff]  }
  0x27   :  { %576 = vmatpush3.bf16.msra.mxu0 %v663_v5  ;;  %645 = vmatpush3.bf16.msra.mxu1 %v663_v5  ;;  %v694_v29 = vld [vmem:[#allocation2 + $0x74] ss:$8 sps:$4 sm:$0xff]   ;;  %v696_v30 = vld [vmem:[#allocation2 + $0x30] ss:$8 sps:$4 sm:$0xff]  }
  0x28   :  { %577 = vmatprep.subr.bf16.mxu0 %v664_v6  ;;  %638 = vmatprep.subr.bf16.mxu1 %v664_v6  ;;  %v697_v31 = vld [vmem:[#allocation2 + $0x70] ss:$8 sps:$4 sm:$0xff]  }
  0x2b   :  { %578 = vmatpush3.bf16.msra.mxu0 %v665_v7  ;;  %646 = vmatpush3.bf16.msra.mxu1 %v665_v7 }
  0x2c   :  { %579 = vmatprep.subr.bf16.mxu0 %v666_v8  ;;  %639 = vmatprep.subr.bf16.mxu1 %v666_v8 }
  0x2f   :  { %580 = vmatpush3.bf16.msra.mxu0 %v667_v9  ;;  %647 = vmatpush3.bf16.msra.mxu1 %v667_v9 }
  0x30   :  { %581 = vmatprep.subr.bf16.mxu0 %v668_v10  ;;  %640 = vmatprep.subr.bf16.mxu1 %v668_v10 }
  0x33   :  { %582 = vmatpush3.bf16.msra.mxu0 %v669_v13  ;;  %648 = vmatpush3.bf16.msra.mxu1 %v669_v13 }
  0x34   :  { %583 = vmatprep.subr.bf16.mxu0 %v670_v14  ;;  %641 = vmatprep.subr.bf16.mxu1 %v670_v14 }
  0x37   :  { %584 = vmatpush3.bf16.msra.mxu0 %v671_v15  ;;  %649 = vmatpush3.bf16.msra.mxu1 %v671_v15 }
  0x38   :  { %585 = vmatprep.subr.bf16.mxu0 %v672_v16  ;;  %642 = vmatprep.subr.bf16.mxu1 %v672_v16 }
  0x3b   :  { %586 = vmatpush3.bf16.msra.mxu0 %v673_v17  ;;  %650 = vmatpush3.bf16.msra.mxu1 %v673_v17 }
  0x3e   :  { %298 = vmatmul.mubr.bf16.vlgmr.msra.gmra.mxu0 %v674_v18  ;;  %330 = vmatmul.mubr.bf16.vlgmr.msra.gmra.mxu1 %v677_v19 }
  0x3f   :  { %305 = vmatprep.mubr.bf16.mxu0 %v680_v20  ;;  %337 = vmatprep.mubr.bf16.mxu1 %v682_v21 }
  0x46   :  { %306 = vmatmul.mubr.bf16.gmra.mxu0 %v684_v22  ;;  %338 = vmatmul.mubr.bf16.gmra.mxu1 %v685_v23 }
  0x47   :  { %313 = vmatprep.mubr.bf16.mxu0 %v686_v24  ;;  %345 = vmatprep.mubr.bf16.mxu1 %v688_v25 }
  0x4e   :  { %314 = vmatmul.mubr.bf16.gmra.mxu0 %v690_v26  ;;  %346 = vmatmul.mubr.bf16.gmra.mxu1 %v691_v27 }
  0x4f   :  { %321 = vmatprep.mubr.bf16.mxu0 %v692_v28  ;;  %353 = vmatprep.mubr.bf16.mxu1 %v694_v29 }
  0x56   :  { %322 = vmatmul.mubr.bf16.gmra.mxu0 %v696_v30  ;;  %354 = vmatmul.mubr.bf16.gmra.mxu1 %v697_v31 }
  0xfe   :  { %v587_v32 = vpop.f32.mrf.mxu0  ;;  %v611_v33 = vpop.f32.mrf.mxu1 }
 0x100   :  { %v588_v34 = vpop.f32.mrf.mxu0  ;;  %v612_v35 = vpop.f32.mrf.mxu1 }
 0x101   :  { %v589_v40 = vadd.f32 %v588_v34, %v587_v32  ;;  %v613_v41 = vadd.f32 %v612_v35, %v611_v33 }
 0x102   :  { %v590_v36 = vpop.f32.mrf.mxu0  ;;  %v614_v37 = vpop.f32.mrf.mxu1 }
 0x104   :  { %v591_v38 = vpop.f32.mrf.mxu0  ;;  %v615_v39 = vpop.f32.mrf.mxu1 }
 0x105   :  { %v592_v42 = vadd.f32 %v591_v38, %v590_v36  ;;  %v616_v43 = vadd.f32 %v615_v39, %v614_v37 }
 0x106   :  { %v593_v44 = vpop.f32.mrf.mxu0  ;;  %v617_v45 = vpop.f32.mrf.mxu1 }
 0x107   :  { %v527_v46 = vpack.c.bf16 %v592_v42, %v589_v40  ;;  %v547_v47 = vpack.c.bf16 %v616_v43, %v613_v41 }
 0x108   :  { %v594_v48 = vpop.f32.mrf.mxu0  ;;  %v618_v49 = vpop.f32.mrf.mxu1 }
 0x109   :  { %528 = vst [vmem:[#allocation7] sm:$0xff] %v527_v46   ;;  %567 = vst [vmem:[#allocation7 + $0x20] sm:$0xff] %v547_v47   ;;  %v595_v54 = vadd.f32 %v594_v48, %v593_v44  ;;  %v619_v55 = vadd.f32 %v618_v49, %v617_v45 }
 0x10a   :  { %v596_v50 = vpop.f32.mrf.mxu0  ;;  %v620_v51 = vpop.f32.mrf.mxu1 }
 0x10c   :  { %v597_v52 = vpop.f32.mrf.mxu0  ;;  %v621_v53 = vpop.f32.mrf.mxu1 }
 0x10d   :  { %v598_v56 = vadd.f32 %v597_v52, %v596_v50  ;;  %v622_v57 = vadd.f32 %v621_v53, %v620_v51 }
 0x10e   :  { %v599_v58 = vpop.f32.mrf.mxu0  ;;  %v623_v59 = vpop.f32.mrf.mxu1 }
 0x10f   :  { %v532_v60 = vpack.c.bf16 %v598_v56, %v595_v54  ;;  %v552_v61 = vpack.c.bf16 %v622_v57, %v619_v55 }
 0x110   :  { %v600_v62 = vpop.f32.mrf.mxu0  ;;  %v624_v63 = vpop.f32.mrf.mxu1 }
 0x111   :  { %564 = vst [vmem:[#allocation7 + $0x8] sm:$0xff] %v532_v60   ;;  %568 = vst [vmem:[#allocation7 + $0x28] sm:$0xff] %v552_v61   ;;  %v601_v4 = vadd.f32 %v600_v62, %v599_v58  ;;  %v625_v5 = vadd.f32 %v624_v63, %v623_v59 }
 0x112   :  { %v602_v0 = vpop.f32.mrf.mxu0  ;;  %v626_v1 = vpop.f32.mrf.mxu1 }
 0x114   :  { %v603_v2 = vpop.f32.mrf.mxu0  ;;  %v627_v3 = vpop.f32.mrf.mxu1 }
 0x115   :  { %v604_v6 = vadd.f32 %v603_v2, %v602_v0  ;;  %v628_v7 = vadd.f32 %v627_v3, %v626_v1 }
 0x116   :  { %v605_v8 = vpop.f32.mrf.mxu0  ;;  %v629_v9 = vpop.f32.mrf.mxu1 }
 0x117   :  { %v537_v10 = vpack.c.bf16 %v604_v6, %v601_v4  ;;  %v557_v11 = vpack.c.bf16 %v628_v7, %v625_v5 }
 0x118   :  { %v606_v12 = vpop.f32.mrf.mxu0  ;;  %v630_v13 = vpop.f32.mrf.mxu1 }
 0x119   :  { %565 = vst [vmem:[#allocation7 + $0x10] sm:$0xff] %v537_v10   ;;  %569 = vst [vmem:[#allocation7 + $0x30] sm:$0xff] %v557_v11   ;;  %v607_v18 = vadd.f32 %v606_v12, %v605_v8  ;;  %v631_v19 = vadd.f32 %v630_v13, %v629_v9 }
 0x11a   :  { %v608_v14 = vpop.f32.mrf.mxu0  ;;  %v632_v15 = vpop.f32.mrf.mxu1 }
 0x11c   :  { %v609_v16 = vpop.f32.mrf.mxu0  ;;  %v633_v17 = vpop.f32.mrf.mxu1 }
 0x11d   :  { %v610_v20 = vadd.f32 %v609_v16, %v608_v14  ;;  %v634_v21 = vadd.f32 %v633_v17, %v632_v15 }
 0x11f   :  { %v542_v22 = vpack.c.bf16 %v610_v20, %v607_v18  ;;  %v562_v23 = vpack.c.bf16 %v634_v21, %v631_v19 }
 0x121   :  { %566 = vst [vmem:[#allocation7 + $0x18] sm:$0xff] %v542_v22   ;;  %570 = vst [vmem:[#allocation7 + $0x38] sm:$0xff] %v562_v23  }
 0x122   :  { %749 = shalt.err (!%p746_p0)
}
 0x123   :  { %453 = dma.vmem_to_hbm [thread:$0]  %s448_s1, 1024, %s803_s2, [#allocation4], %s768_s19, %s768_s19, %s769_s20  }
 0x124   :  { %762 = dma.done.wait [#allocation4], 1024  }
 0x125   :  { %763 = vsyncadd [#allocation4], 4294966272 }
 0x126   :  { %457 = vsyncpa [#allocation3], 1 }
 0x127   :  { %458 = vsyncpa [#allocation6], 1 }
 0x128   :  { %459 = vsyncpa [#allocation4], 1 }

</bundles_post_ra>
